<compile_context>
chip_gen: v7x
topology: tpu7x:2x2x1
jax: 0.10.0
libtpu: 0.0.40
codegen_flags: <defaults>
</compile_context>

<pallas_src>
import jax
import jax.numpy as jnp
from jax.experimental import pallas as pl
from jax.experimental.pallas import tpu as pltpu


def _probe_kernel(x_ref, w_ref, b_ref, o_ref):
    # x_ref: (TB, D) f32 VMEM (streamed tile)
    # w_ref: (1, D)  f32 VMEM (resident across the grid)
    # b_ref: (1, 1)  f32 SMEM (scalar bias)
    # o_ref: (1, TB) f32 VMEM (lane-dense output row)
    #
    # Contract the feature (lane) dim of both operands on the MXU:
    #   (1, D) . (TB, D)^T -> (1, TB), accumulated in f32.
    z = jax.lax.dot_general(
        w_ref[...],
        x_ref[...],
        dimension_numbers=(((1,), (1,)), ((), ())),
        preferred_element_type=jnp.float32,
    )
    z = z + b_ref[0, 0]
    o_ref[...] = jax.nn.sigmoid(z).astype(o_ref.dtype)


def _round_up(n, m):
    return ((n + m - 1) // m) * m


def _choose_tile(B, D, budget_bytes=12 * 1024 * 1024):
    """Largest batch tile whose double-buffered (TB, D) f32 stream fits the
    budget. Single-tile path only needs TB % 8 == 0; multi-tile path keeps
    TB % 128 == 0 so the (1, TB) output block stays lane-aligned."""
    tb_max = max(8, budget_bytes // (2 * D * 4))
    b_pad8 = _round_up(B, 8)
    if b_pad8 <= tb_max:
        return b_pad8, b_pad8
    tb = min(2048, max(128, (tb_max // 128) * 128))
    return tb, _round_up(B, tb)


@jax.jit
def simple_probe(x, w, b):
    """SimpleProbe forward: sigmoid(x @ w + b).

    x: (B, D) f32, w: (D, 1) f32, b: () f32  ->  (B, 1) f32
    """
    B, D = x.shape
    tb, b_pad = _choose_tile(B, D)
    num_tiles = b_pad // tb

    x_p = x.astype(jnp.float32)
    if b_pad != B:
        # Padded rows compute sigmoid(bias) and are sliced off below.
        x_p = jnp.pad(x_p, ((0, b_pad - B), (0, 0)))
    w_row = jnp.reshape(w.astype(jnp.float32), (1, D))
    b2d = jnp.reshape(b.astype(jnp.float32), (1, 1))

    out = pl.pallas_call(
        _probe_kernel,
        out_shape=jax.ShapeDtypeStruct((1, b_pad), jnp.float32),
        grid_spec=pltpu.PrefetchScalarGridSpec(
            num_scalar_prefetch=0,
            grid=(num_tiles,),
            in_specs=[
                pl.BlockSpec((tb, D), lambda i: (i, 0)),   # streamed x tiles
                pl.BlockSpec((1, D), lambda i: (0, 0)),    # weight stays resident
                pl.BlockSpec(memory_space=pltpu.SMEM),     # scalar bias
            ],
            out_specs=pl.BlockSpec((1, tb), lambda i: (0, i)),  # lane-dense slab
        ),
        compiler_params=pltpu.CompilerParams(
            # Batch tiles are independent -> shard across TCs on v7x megacore.
            dimension_semantics=("parallel",),
        ),
        cost_estimate=pl.CostEstimate(
            flops=2 * b_pad * D,
            transcendentals=b_pad,
            bytes_accessed=4 * (b_pad * D + D + b_pad),
        ),
    )(x_p, w_row, b2d)

    return jnp.reshape(out, (b_pad,))[:B].reshape(B, 1)


def simple_probe_ref(x, w, b):
    return jax.nn.sigmoid(x @ w + b)


if __name__ == "__main__":
    # Small shapes consistent with the module's forward: (batch, input_dim).
    B, D = 8, 256
    key = jax.random.PRNGKey(0)
    kx, kw, kb = jax.random.split(key, 3)

    x = jax.random.normal(kx, (B, D), dtype=jnp.float32)
    # Deterministic "Linear(input_dim, 1)" parameters (Kaiming-uniform-ish scale).
    bound = 1.0 / (D ** 0.5)
    w = jax.random.uniform(kw, (D, 1), minval=-bound, maxval=bound, dtype=jnp.float32)
    b = jax.random.uniform(kb, (), minval=-bound, maxval=bound, dtype=jnp.float32)

    out = simple_probe(x, w, b)
    out = jax.block_until_ready(out)

    ref = simple_probe_ref(x, w, b)
    assert out.shape == (B, 1)
    assert jnp.allclose(out, ref, atol=1e-5, rtol=1e-5)

    print("KERNEL_OK")
</pallas_src>

<mosaic_0001>
module attributes {stable_mosaic.version = 11 : i64} {
  func.func @_probe_kernel(%arg0: i32, %arg1: memref<8x256xf32, #tpu.memory_space<vmem>>, %arg2: memref<1x256xf32, #tpu.memory_space<vmem>>, %arg3: memref<1x1xf32, #tpu.memory_space<smem>>, %arg4: memref<1x8xf32, #tpu.memory_space<vmem>>) attributes {dimension_semantics = [#tpu.dimension_semantics<parallel>], iteration_bounds = array<i64: 1>, scalar_prefetch = 0 : i64, scratch_operands = 0 : i64, tpu.core_type = #tpu.core_type<tc>, window_params = [{transform_indices = @transform_0, window_bounds = array<i64: 8, 256>}, {pipeline_mode = #tpu.pipeline_mode<synchronous>, transform_indices = @transform_1, window_bounds = array<i64: 1, 256>}, {transform_indices = @transform_2, window_bounds = array<i64: 1, 1>}, {transform_indices = @transform_3, window_bounds = array<i64: 1, 8>}]} {
    %c0 = arith.constant 0 : index
    %c0_0 = arith.constant 0 : index
    %0 = vector.load %arg2[%c0, %c0_0] : memref<1x256xf32, #tpu.memory_space<vmem>>, vector<1x256xf32>
    %c0_1 = arith.constant 0 : index
    %c0_2 = arith.constant 0 : index
    %1 = vector.load %arg1[%c0_1, %c0_2] : memref<8x256xf32, #tpu.memory_space<vmem>>, vector<8x256xf32>
    %cst = arith.constant dense<0.000000e+00> : vector<1x8xf32>
    %2 = tpu.matmul %0, %1, %cst {dimension_numbers = #tpu.dot_dimension_numbers<[1], [1], [0], [0], [0, 0, 1, 0], [], []>} : vector<1x256xf32>, vector<8x256xf32>, vector<1x8xf32> -> vector<1x8xf32>
    %c0_3 = arith.constant 0 : index
    %c0_4 = arith.constant 0 : index
    %3 = memref.load %arg3[%c0_3, %c0_4] : memref<1x1xf32, #tpu.memory_space<smem>>
    %4 = vector.broadcast %3 : f32 to vector<1x8xf32>
    %5 = arith.addf %2, %4 : vector<1x8xf32>
    %6 = arith.negf %5 : vector<1x8xf32>
    %7 = math.exp %6 : vector<1x8xf32>
    %cst_5 = arith.constant 1.000000e+00 : f32
    %8 = vector.broadcast %cst_5 : f32 to vector<1x8xf32>
    %9 = arith.addf %8, %7 : vector<1x8xf32>
    %10 = arith.divf %8, %9 : vector<1x8xf32>
    %c0_6 = arith.constant 0 : index
    %c0_7 = arith.constant 0 : index
    %11 = vector.load %arg4[%c0_6, %c0_7] : memref<1x8xf32, #tpu.memory_space<vmem>>, vector<1x8xf32>
    tpu.vector_store %arg4[%c0_6, %c0_7], %10 {strides = array<i32>} : memref<1x8xf32, #tpu.memory_space<vmem>>, vector<1x8xf32>,
    return
  }
  func.func @transform_0(%arg0: i32) -> (i32, i32) {
    %c0_i32 = arith.constant 0 : i32
    %c0_i32_0 = arith.constant 0 : i32
    return %arg0, %c0_i32 : i32, i32
  }
  func.func @transform_1(%arg0: i32) -> (i32, i32) {
    %c0_i32 = arith.constant 0 : i32
    %c0_i32_0 = arith.constant 0 : i32
    %c0_i32_1 = arith.constant 0 : i32
    return %c0_i32, %c0_i32_0 : i32, i32
  }
  func.func @transform_2(%arg0: i32) -> (i32, i32) {
    %c0_i32 = arith.constant 0 : i32
    %c0_i32_0 = arith.constant 0 : i32
    %c0_i32_1 = arith.constant 0 : i32
    return %c0_i32, %c0_i32_0 : i32, i32
  }
  func.func @transform_3(%arg0: i32) -> (i32, i32) {
    %c0_i32 = arith.constant 0 : i32
    %c0_i32_0 = arith.constant 0 : i32
    return %c0_i32, %arg0 : i32, i32
  }
}

</mosaic_0001>

<bundles_post_ra>
// kernel: simple_probe.1
= control target key start
LH: loop header
LB: loop body
LE: loop exit
PB: predicated region body
PF: predicated region fallthrough
CT: control target
= control target key end

     0   :  { %9 = vsyncpa [#allocation4], 0  ;;  %s244_s0 = inlined_call_operand.hbm [shape: f32[8,256], index: 0, kind: input, shape index: {}]   ;;  %s245_s1 = inlined_call_operand.vmem [shape: f32[1,256], index: 1, kind: input, shape index: {}]   ;;  %s246_s2 = inlined_call_operand.<no memory space> [shape: f32[1,1], index: 2, kind: input, shape index: {}]   ;;  %s247_s3 = inlined_call_operand.hbm [shape: f32[1,8], index: 3, kind: output, shape index: {}]  }
   0x1   :  { %10 = vsyncpa [#allocation5], 0  ;;  %s192_s12 = smov [#allocation3]   ;;  %s144_s16 = scalar_lea.hbm %s244_s0, 256 }
   0x2   :  { %s17_s13 = sshll.u32 %s192_s12, 4  ;;  %p145_p0 = scmp.ne.s32.totalorder %s244_s0, %s144_s16  ;;  %s18_s13 = int_to_ptr.vmem [resolvable:$true] %s17_s13 }
   0x3   :  { %p148_p1 = scmp.lt.u32.totalorder %s144_s16, %s244_s0 }
   0x5   :  { %p150_p2 = pnand %p148_p1, %p145_p0 }
   0x7   :  { %153 = shalt.err (!%p150_p2)
}
   0x8   :  { %s154_s21 = scalar_lea.vmem %s18_s13, 256  ;;  %p159_p4 = scmp.lt.s32.totalorder %s18_s13, %s18_s13 }
   0x9   :  { %p155_p3 = scmp.ne.s32.totalorder %s18_s13, %s154_s21  ;;  %p160_p5 = scmp.lt.s32.totalorder %s154_s21, %s154_s21 }
   0xb   :  { %p161_p6 = por %p160_p5, %p159_p4 }
   0xd   :  { %p162_p7 = pnand %p161_p6, %p155_p3 }
   0xf   :  { %165 = shalt.err (!%p162_p7)
}
  0x10   :  { %20 = dma.hbm_to_vmem [thread:$0]  %s244_s0, 256, %s18_s13, [#allocation4]  }
  0x11   :  { %188 = dma.done.wait [#allocation4], 256  }
  0x12   :  { %189 = vsyncadd [#allocation4], 4294967040  ;;  %v34_v0 = vlaneseq  ;;  %v30_v4 = vld [vmem:[#allocation3 + $0x8] sm:$0xff]  ;;  %v29_v5 = vld [vmem:[#allocation3] sm:$0xff]  ;;  %v32_v9 = vstv %s246_s2  ;;  %s193_s27 = smov [#allocation6]   ;;  %vm120_vm0 = vcmask 57344  }
  0x13   :  { %v28_v6 = vld [vmem:[%s245_s1] sm:$0x3]  ;;  %44 = vmatprep.subr.mxu0 %v30_v4  ;;  %s128_s1 = sshll.u32 %s193_s27, 4  ;;  %s129_s1 = int_to_ptr.vmem [resolvable:$true] %s128_s1 }
  0x14   :  { %v35_v1 = vshrl.u32 %v34_v0, 7  ;;  %45 = vmatpush1.xpose.msra.mxu0 %v29_v5  ;;  %s166_s28 = scalar_lea.vmem %s129_s1, 16  ;;  %s170_s29 = scalar_lea.vmem %s129_s1, 32 }
  0x15   :  { %p167_p8 = scmp.ne.s32.totalorder %s129_s1, %s166_s28  ;;  %p171_p9 = scmp.lt.s32.totalorder %s129_s1, %s129_s1 }
  0x16   :  { %v36_v2 = vsub.s32 0, %v35_v1  ;;  %v40_v3 = vsub.s32 1, %v35_v1  ;;  %p172_p10 = scmp.lt.s32.totalorder %s170_s29, %s166_s28 }
  0x18   :  { %v37_v7 = vrot.slane %v28_v6, %v36_v2  ;;  %v41_v8 = vrot.slane %v28_v6, %v40_v3  ;;  %p173_p11 = por %p172_p10, %p171_p9 }
  0x1a   :  { %108 = vmatprep.mubr.f32.mxu0 %v41_v8  ;;  %p174_p12 = pnand %p173_p11, %p167_p8 }
  0x1b   :  { %109 = vmatmul.mubr.f32.vlgmr.msra.gmra.mrb[0].mxu0 %v37_v7 }
  0xee   :  { %v110_v10 = vpop.f32.mrb[0].mxu0 }
  0xef   :  { %v111_v11 = vadd.f32 %v110_v10, %v32_v9  ;;  %v112_v12 = vpop.f32.mrb[1].mxu0 }
  0xf1   :  { %v137_v13 = vmul.f32 -1.442695, %v111_v11 }
  0xf3   :  { %140 = vpow2.f32 %v137_v13 }
  0xfd   :  { %v141_v14 = vpop.eup %140 }
  0xfe   :  { %v117_v15 = vadd.f32 1.0, %v141_v14 }
 0x100   :  { %142 = vrcp.f32 %v117_v15 }
 0x10a   :  { %v143_v16 = vpop.eup %142 }
 0x10b   :  { %121 = vst.msk [vmem:[#allocation6] sm:$0x1] %vm120_vm0, %v143_v16 }
 0x10c   :  { %177 = shalt.err (!%p174_p12)
}
 0x10d   :  { %s178_s4 = scalar_lea.hbm %s247_s3, 16 }
 0x10e   :  { %p179_p13 = scmp.ne.s32.totalorder %s247_s3, %s178_s4  ;;  %p182_p0 = scmp.lt.u32.totalorder %s178_s4, %s247_s3 }
 0x110   :  { %p184_p1 = pnand %p182_p0, %p179_p13 }
 0x112   :  { %187 = shalt.err (!%p184_p1)
}
 0x113   :  { %131 = dma.vmem_to_hbm [thread:$0]  %s129_s1, 16, %s247_s3, [#allocation5]  }
 0x114   :  { %190 = dma.done.wait [#allocation5], 16  }
 0x115   :  { %191 = vsyncadd [#allocation5], 4294967280 }
 0x116   :  { %135 = vsyncpa [#allocation4], 1 }
 0x117   :  { %136 = vsyncpa [#allocation5], 1 }

</bundles_post_ra>
